<compile_context>
chip_gen: v5e
topology: v5e:2x2
jax: 0.10.0
libtpu: 0.0.40
codegen_flags: <defaults>
</compile_context>

<pallas_src>
import functools
import math

import jax
import jax.numpy as jnp
from jax.experimental import pallas as pl
from jax.experimental.pallas import tpu as pltpu


# ------------------------------ configuration ------------------------------

VOCAB = 100
TYPE_VOCAB = 2
MAX_POS = 16
HIDDEN = 32
HEADS = 2
HEAD_DIM = HIDDEN // HEADS
LAYERS = 2
INTER = 64
LANE_PAD = 128                 # lane-dense padded width for tiny classifier outputs
MXU_DTYPE = jnp.bfloat16       # MXU input dtype; accumulation stays f32


# ------------------------------ in-kernel helpers ------------------------------

def _mm(a, b):
    """MXU matmul: bf16 inputs, f32 accumulation."""
    return jnp.dot(a.astype(MXU_DTYPE), b.astype(MXU_DTYPE),
                   preferred_element_type=jnp.float32)


def _ln(x, g, b, eps=1e-12):
    """Layernorm over the last axis, f32 statistics."""
    mu = jnp.mean(x, axis=-1, keepdims=True)
    var = jnp.mean(jnp.square(x - mu), axis=-1, keepdims=True)
    return (x - mu) * jax.lax.rsqrt(var + eps) * g + b


def _encoder_step(x, bias, scale,
                  qkv_w, qkv_b, ao_w, ao_b, ln1_g, ln1_b,
                  i_w, i_b, o_w, o_b, ln2_g, ln2_b):
    """One BERT encoder layer on an (S, H) f32 activation (all in VMEM)."""
    # Fused QKV projection: a single (S,H) x (H,3H) matmul.
    qkv = _mm(x, qkv_w) + qkv_b                                  # (S, 3H)
    q = qkv[:, 0:HIDDEN]
    k = qkv[:, HIDDEN:2 * HIDDEN]
    v = qkv[:, 2 * HIDDEN:3 * HIDDEN]

    # All heads inside one kernel (static unrolled loop; HEADS is tiny).
    ctx_heads = []
    for h in range(HEADS):
        sl = slice(h * HEAD_DIM, (h + 1) * HEAD_DIM)
        q_h, k_h, v_h = q[:, sl], k[:, sl], v[:, sl]
        s = jnp.einsum('qd,kd->qk',
                       q_h.astype(MXU_DTYPE), k_h.astype(MXU_DTYPE),
                       preferred_element_type=jnp.float32) * scale + bias
        m = jnp.max(s, axis=-1, keepdims=True)
        p = jnp.exp(s - m)
        p = p * pl.reciprocal(jnp.sum(p, axis=-1, keepdims=True), approx=True)
        ctx_heads.append(_mm(p, v_h))                            # (S, Dh)
    ctx = jnp.concatenate(ctx_heads, axis=-1)                    # (S, H)

    # Attention output projection + fused residual + layernorm.
    attn_out = _mm(ctx, ao_w) + ao_b
    h1 = _ln(attn_out + x, ln1_g, ln1_b)

    # Fused FFN: intermediate GELU activation never leaves VMEM.
    # (HF BERT default is erf-GELU; tanh approximation used here.)
    inter = jax.nn.gelu(_mm(h1, i_w) + i_b, approximate=True)
    ffn = _mm(inter, o_w) + o_b
    return _ln(ffn + h1, ln2_g, ln2_b)


# ------------------------------ fused forward kernels ------------------------------

def _fused_qa_kernel(x_ref, bias_ref, emb_g_ref, emb_b_ref,
                     qkv_w_ref, qkv_b_ref, ao_w_ref, ao_b_ref,
                     ln1_g_ref, ln1_b_ref, i_w_ref, i_b_ref,
                     o_w_ref, o_b_ref, ln2_g_ref, ln2_b_ref,
                     pw_ref, pb_ref, cw_ref, cb_ref,
                     out_ref, h_scratch, *, scale, add_residual):
    """Whole BERT forward (step==0 branch) for one batch element; grid=(B, LAYERS)."""
    l = pl.program_id(1)

    @pl.when(l == 0)
    def _():
        # Embedding layernorm: seed the persistent activation scratch.
        h_scratch[...] = _ln(x_ref[0].astype(jnp.float32),
                             emb_g_ref[...], emb_b_ref[...])

    h_scratch[...] = _encoder_step(
        h_scratch[...], bias_ref[0].astype(jnp.float32), scale,
        qkv_w_ref[0], qkv_b_ref[0], ao_w_ref[0], ao_b_ref[0],
        ln1_g_ref[0], ln1_b_ref[0], i_w_ref[0], i_b_ref[0],
        o_w_ref[0], o_b_ref[0], ln2_g_ref[0], ln2_b_ref[0])

    @pl.when(l == pl.num_programs(1) - 1)
    def _():
        # Stage projection (+ optional residual) fused with both span classifiers.
        # cls weights are pre-concatenated + zero-padded lane-dense (H, 128):
        # columns 0:2 = start logits, 2:4 = end logits.
        h = h_scratch[...]
        proj = _mm(h, pw_ref[...]) + pb_ref[...]
        h2 = h + proj if add_residual else proj
        out_ref[0] = (_mm(h2, cw_ref[...]) + cb_ref[...]).astype(out_ref.dtype)


def _fused_sent_kernel(x_ref, bias_ref, emb_g_ref, emb_b_ref,
                       qkv_w_ref, qkv_b_ref, ao_w_ref, ao_b_ref,
                       ln1_g_ref, ln1_b_ref, i_w_ref, i_b_ref,
                       o_w_ref, o_b_ref, ln2_g_ref, ln2_b_ref,
                       cw_ref, cb_ref,
                       out_ref, h_scratch, *, scale):
    """Whole BERT forward (step!=0 branch): sentiment logits from the [CLS] row."""
    l = pl.program_id(1)

    @pl.when(l == 0)
    def _():
        h_scratch[...] = _ln(x_ref[0].astype(jnp.float32),
                             emb_g_ref[...], emb_b_ref[...])

    h_scratch[...] = _encoder_step(
        h_scratch[...], bias_ref[0].astype(jnp.float32), scale,
        qkv_w_ref[0], qkv_b_ref[0], ao_w_ref[0], ao_b_ref[0],
        ln1_g_ref[0], ln1_b_ref[0], i_w_ref[0], i_b_ref[0],
        o_w_ref[0], o_b_ref[0], ln2_g_ref[0], ln2_b_ref[0])

    @pl.when(l == pl.num_programs(1) - 1)
    def _():
        cls = h_scratch[0:1, :]                                  # (1, H) [CLS] row
        out_ref[0] = (_mm(cls, cw_ref[...]) + cb_ref[...]).astype(out_ref.dtype)


# ------------------------------ Pallas wrappers ------------------------------

def _encoder_specs(B, S, H):
    """Common in_specs for [x, bias, emb_ln, stacked layer weights]."""
    def stacked(shape):
        nd = len(shape)
        return pl.BlockSpec((1,) + shape, lambda b, l, _n=nd: (l,) + (0,) * _n)

    def shared(shape):
        nd = len(shape)
        return pl.BlockSpec(shape, lambda b, l, _n=nd: (0,) * _n)

    specs = [
        pl.BlockSpec((1, S, H), lambda b, l: (b, 0, 0)),       # embeddings
        pl.BlockSpec((1, 1, S), lambda b, l: (b, 0, 0)),       # additive mask bias
        shared((1, H)), shared((1, H)),                        # emb LN
        stacked((H, 3 * H)), stacked((1, 3 * H)),              # qkv
        stacked((H, H)), stacked((1, H)),                      # attn out proj
        stacked((1, H)), stacked((1, H)),                      # ln1
        stacked((H, INTER)), stacked((1, INTER)),              # ffn in
        stacked((INTER, H)), stacked((1, H)),                  # ffn out
        stacked((1, H)), stacked((1, H)),                      # ln2
    ]
    return specs, shared


def _encoder_args(params, emb, bias):
    return (emb, bias,
            params["emb_ln_g"], params["emb_ln_b"],
            params["qkv_w"], params["qkv_b"], params["ao_w"], params["ao_b"],
            params["ln1_g"], params["ln1_b"], params["i_w"], params["i_b"],
            params["o_w"], params["o_b"], params["ln2_g"], params["ln2_b"])


def pallas_bert_qa(emb, bias, params, proj_w, proj_b, add_residual):
    """emb: (B,S,H) f32; bias: (B,1,S) f32 additive mask.  Returns (B,S,128) logits."""
    B, S, H = emb.shape
    specs, shared = _encoder_specs(B, S, H)
    specs += [shared((H, H)), shared((1, H)),                  # stage projection
              shared((H, LANE_PAD)), shared((1, LANE_PAD))]    # padded span classifiers

    kern = functools.partial(_fused_qa_kernel,
                             scale=1.0 / math.sqrt(HEAD_DIM),
                             add_residual=add_residual)
    return pl.pallas_call(
        kern,
        out_shape=jax.ShapeDtypeStruct((B, S, LANE_PAD), jnp.float32),
        grid=(B, LAYERS),
        in_specs=specs,
        out_specs=pl.BlockSpec((1, S, LANE_PAD), lambda b, l: (b, 0, 0)),
        scratch_shapes=[pltpu.VMEM((S, H), jnp.float32)],
        compiler_params=pltpu.CompilerParams(
            dimension_semantics=("parallel", "arbitrary")),
    )(*_encoder_args(params, emb, bias),
      proj_w, proj_b, params["qa_cls_w"], params["qa_cls_b"])


def pallas_bert_sent(emb, bias, params):
    """Returns (B, 1, 128) padded sentiment logits from the [CLS] token."""
    B, S, H = emb.shape
    specs, shared = _encoder_specs(B, S, H)
    specs += [shared((H, LANE_PAD)), shared((1, LANE_PAD))]    # padded sentiment classifier

    kern = functools.partial(_fused_sent_kernel, scale=1.0 / math.sqrt(HEAD_DIM))
    return pl.pallas_call(
        kern,
        out_shape=jax.ShapeDtypeStruct((B, 1, LANE_PAD), jnp.float32),
        grid=(B, LAYERS),
        in_specs=specs,
        out_specs=pl.BlockSpec((1, 1, LANE_PAD), lambda b, l: (b, 0, 0)),
        scratch_shapes=[pltpu.VMEM((S, H), jnp.float32)],
        compiler_params=pltpu.CompilerParams(
            dimension_semantics=("parallel", "arbitrary")),
    )(*_encoder_args(params, emb, bias),
      params["sent_w"], params["sent_b"])


# ------------------------------ parameters ------------------------------

def _dense_init(key, in_dim, out_dim):
    # Pre-transposed (in, out): kernels do x @ W with no in-kernel transpose.
    return jax.random.normal(key, (in_dim, out_dim), jnp.float32) * 0.02


def init_params(key):
    keys = iter(jax.random.split(key, 64))
    p = {
        "word_emb": jax.random.normal(next(keys), (VOCAB, HIDDEN), jnp.float32) * 0.02,
        "pos_emb": jax.random.normal(next(keys), (MAX_POS, HIDDEN), jnp.float32) * 0.02,
        "type_emb": jax.random.normal(next(keys), (TYPE_VOCAB, HIDDEN), jnp.float32) * 0.02,
        "emb_ln_g": jnp.ones((1, HIDDEN), jnp.float32),
        "emb_ln_b": jnp.zeros((1, HIDDEN), jnp.float32),
    }

    # Per-layer weights, then stacked with a leading layer axis for streaming.
    fields = {k: [] for k in ("qkv_w", "qkv_b", "ao_w", "ao_b", "ln1_g", "ln1_b",
                              "i_w", "i_b", "o_w", "o_b", "ln2_g", "ln2_b")}
    for _ in range(LAYERS):
        q_w = _dense_init(next(keys), HIDDEN, HIDDEN)
        k_w = _dense_init(next(keys), HIDDEN, HIDDEN)
        v_w = _dense_init(next(keys), HIDDEN, HIDDEN)
        fields["qkv_w"].append(jnp.concatenate([q_w, k_w, v_w], axis=1))   # (H, 3H)
        fields["qkv_b"].append(jnp.zeros((1, 3 * HIDDEN), jnp.float32))
        fields["ao_w"].append(_dense_init(next(keys), HIDDEN, HIDDEN))
        fields["ao_b"].append(jnp.zeros((1, HIDDEN), jnp.float32))
        fields["ln1_g"].append(jnp.ones((1, HIDDEN), jnp.float32))
        fields["ln1_b"].append(jnp.zeros((1, HIDDEN), jnp.float32))
        fields["i_w"].append(_dense_init(next(keys), HIDDEN, INTER))
        fields["i_b"].append(jnp.zeros((1, INTER), jnp.float32))
        fields["o_w"].append(_dense_init(next(keys), INTER, HIDDEN))
        fields["o_b"].append(jnp.zeros((1, HIDDEN), jnp.float32))
        fields["ln2_g"].append(jnp.ones((1, HIDDEN), jnp.float32))
        fields["ln2_b"].append(jnp.zeros((1, HIDDEN), jnp.float32))
    for name, vals in fields.items():
        p[name] = jnp.stack(vals)                                          # (L, ...)

    # classifier_start (H,2) + classifier_end (H,2) concatenated and zero-padded
    # to a lane-dense (H, 128) output matmul; cols 0:2 = start, 2:4 = end.
    start_w = _dense_init(next(keys), HIDDEN, 2)
    end_w = _dense_init(next(keys), HIDDEN, 2)
    qa_w = jnp.zeros((HIDDEN, LANE_PAD), jnp.float32)
    p["qa_cls_w"] = qa_w.at[:, 0:2].set(start_w).at[:, 2:4].set(end_w)
    p["qa_cls_b"] = jnp.zeros((1, LANE_PAD), jnp.float32)

    sent_w = _dense_init(next(keys), HIDDEN, 3)
    p["sent_w"] = jnp.zeros((HIDDEN, LANE_PAD), jnp.float32).at[:, 0:3].set(sent_w)
    p["sent_b"] = jnp.zeros((1, LANE_PAD), jnp.float32)

    # Stage projections from BERTModel.__init__ (AO/OA exist but are unused in
    # forward, exactly like the PyTorch module).
    for name in ("AA", "AO", "OO", "OA"):
        p[name + "_w"] = _dense_init(next(keys), HIDDEN, HIDDEN)
        p[name + "_b"] = jnp.zeros((1, HIDDEN), jnp.float32)
    return p


# ------------------------------ forward pass ------------------------------

@functools.partial(jax.jit, static_argnames=("step", "stage"))
def bert_model_forward(params, query_tensor, query_mask, query_seg, *, step, stage):
    """Mirrors BERTModel.forward (step/stage are static Python values)."""
    input_ids = query_tensor.astype(jnp.int32)
    token_type_ids = query_seg.astype(jnp.int32)
    B, S = input_ids.shape
    assert S <= MAX_POS, "sequence length exceeds position-embedding table"

    # Embedding gathers are plain-JAX glue; everything after is one Pallas call.
    emb = (jnp.take(params["word_emb"], input_ids, axis=0)
           + params["pos_emb"][None, :S, :]
           + jnp.take(params["type_emb"], token_type_ids, axis=0))
    bias = (1.0 - query_mask.astype(jnp.float32)).reshape(B, 1, S) * -10000.0

    if step == 0:
        # Exactly the PyTorch mapping:
        #   'AA' -> AA(h); 'AO' -> h + OO(h); 'OO' -> OO(h); else -> h + AA(h)
        if stage == "AA":
            proj_w, proj_b, add_res = params["AA_w"], params["AA_b"], False
        elif stage == "AO":
            proj_w, proj_b, add_res = params["OO_w"], params["OO_b"], True
        elif stage == "OO":
            proj_w, proj_b, add_res = params["OO_w"], params["OO_b"], False
        else:
            proj_w, proj_b, add_res = params["AA_w"], params["AA_b"], True
        logits = pallas_bert_qa(emb, bias, params, proj_w, proj_b, add_res)
        out_start = logits[:, :, 0:2]                                 # (B, S, 2)
        out_end = logits[:, :, 2:4]                                   # (B, S, 2)
        return out_start, out_end
    else:
        logits = pallas_bert_sent(emb, bias, params)                  # (B, 1, 128)
        return logits[:, 0, 0:3]                                      # (B, 3)


# --------------------------------- main ---------------------------------

if __name__ == "__main__":
    B, S = 2, 8
    key = jax.random.PRNGKey(0)
    kp, kid = jax.random.split(key)

    params = init_params(kp)
    query_tensor = jax.random.randint(kid, (B, S), 0, VOCAB, dtype=jnp.int32)
    query_mask = jnp.array([[1, 1, 1, 1, 1, 1, 0, 0],
                            [1, 1, 1, 1, 1, 1, 1, 1]], dtype=jnp.float32)
    query_seg = jnp.zeros((B, S), dtype=jnp.int32)

    # step == 0 branch (span start/end logits)
    out_start, out_end = bert_model_forward(params, query_tensor, query_mask,
                                            query_seg, step=0, stage="AO")
    # step != 0 branch (sentiment logits from [CLS])
    sent = bert_model_forward(params, query_tensor, query_mask,
                              query_seg, step=1, stage="AO")

    jax.block_until_ready((out_start, out_end, sent))
    assert out_start.shape == (B, S, 2)
    assert out_end.shape == (B, S, 2)
    assert sent.shape == (B, 3)
    assert jnp.all(jnp.isfinite(out_start)) and jnp.all(jnp.isfinite(out_end))
    assert jnp.all(jnp.isfinite(sent))
    print("KERNEL_OK")
</pallas_src>

<mosaic_0001>
module attributes {stable_mosaic.version = 11 : i64} {
  func.func @_fused_qa_kernel(%arg0: i32, %arg1: i32, %arg2: memref<1x8x32xf32, #tpu.memory_space<vmem>>, %arg3: memref<1x1x8xf32, #tpu.memory_space<vmem>>, %arg4: memref<1x32xf32, #tpu.memory_space<vmem>>, %arg5: memref<1x32xf32, #tpu.memory_space<vmem>>, %arg6: memref<1x32x96xf32, #tpu.memory_space<vmem>>, %arg7: memref<1x1x96xf32, #tpu.memory_space<vmem>>, %arg8: memref<1x32x32xf32, #tpu.memory_space<vmem>>, %arg9: memref<1x1x32xf32, #tpu.memory_space<vmem>>, %arg10: memref<1x1x32xf32, #tpu.memory_space<vmem>>, %arg11: memref<1x1x32xf32, #tpu.memory_space<vmem>>, %arg12: memref<1x32x64xf32, #tpu.memory_space<vmem>>, %arg13: memref<1x1x64xf32, #tpu.memory_space<vmem>>, %arg14: memref<1x64x32xf32, #tpu.memory_space<vmem>>, %arg15: memref<1x1x32xf32, #tpu.memory_space<vmem>>, %arg16: memref<1x1x32xf32, #tpu.memory_space<vmem>>, %arg17: memref<1x1x32xf32, #tpu.memory_space<vmem>>, %arg18: memref<32x32xf32, #tpu.memory_space<vmem>>, %arg19: memref<1x32xf32, #tpu.memory_space<vmem>>, %arg20: memref<32x128xf32, #tpu.memory_space<vmem>>, %arg21: memref<1x128xf32, #tpu.memory_space<vmem>>, %arg22: memref<1x8x128xf32, #tpu.memory_space<vmem>>, %arg23: memref<8x32xf32, #tpu.memory_space<vmem>>) attributes {dimension_semantics = [#tpu.dimension_semantics<parallel>, #tpu.dimension_semantics<arbitrary>], iteration_bounds = array<i64: 2, 2>, scalar_prefetch = 0 : i64, scratch_operands = 1 : i64, tpu.core_type = #tpu.core_type<tc>, window_params = [{transform_indices = @transform_0, window_bounds = array<i64: 1, 8, 32>}, {transform_indices = @transform_1, window_bounds = array<i64: 1, 1, 8>}, {pipeline_mode = #tpu.pipeline_mode<synchronous>, transform_indices = @transform_2, window_bounds = array<i64: 1, 32>}, {pipeline_mode = #tpu.pipeline_mode<synchronous>, transform_indices = @transform_3, window_bounds = array<i64: 1, 32>}, {transform_indices = @transform_4, window_bounds = array<i64: 1, 32, 96>}, {transform_indices = @transform_5, window_bounds = array<i64: 1, 1, 96>}, {transform_indices = @transform_6, window_bounds = array<i64: 1, 32, 32>}, {transform_indices = @transform_7, window_bounds = array<i64: 1, 1, 32>}, {transform_indices = @transform_8, window_bounds = array<i64: 1, 1, 32>}, {transform_indices = @transform_9, window_bounds = array<i64: 1, 1, 32>}, {transform_indices = @transform_10, window_bounds = array<i64: 1, 32, 64>}, {transform_indices = @transform_11, window_bounds = array<i64: 1, 1, 64>}, {transform_indices = @transform_12, window_bounds = array<i64: 1, 64, 32>}, {transform_indices = @transform_13, window_bounds = array<i64: 1, 1, 32>}, {transform_indices = @transform_14, window_bounds = array<i64: 1, 1, 32>}, {transform_indices = @transform_15, window_bounds = array<i64: 1, 1, 32>}, {pipeline_mode = #tpu.pipeline_mode<synchronous>, transform_indices = @transform_16, window_bounds = array<i64: 32, 32>}, {pipeline_mode = #tpu.pipeline_mode<synchronous>, transform_indices = @transform_17, window_bounds = array<i64: 1, 32>}, {pipeline_mode = #tpu.pipeline_mode<synchronous>, transform_indices = @transform_18, window_bounds = array<i64: 32, 128>}, {pipeline_mode = #tpu.pipeline_mode<synchronous>, transform_indices = @transform_19, window_bounds = array<i64: 1, 128>}, {transform_indices = @transform_20, window_bounds = array<i64: 1, 8, 128>}]} {
    %c0_i32 = arith.constant 0 : i32
    %0 = arith.cmpi eq, %arg1, %c0_i32 : i32
    %1 = arith.extui %0 : i1 to i32
    %c0_i32_0 = arith.constant 0 : i32
    %2 = arith.cmpi ne, %1, %c0_i32_0 : i32
    scf.if %2 {
      %c0_71 = arith.constant 0 : index
      %c0_72 = arith.constant 0 : index
      %c0_73 = arith.constant 0 : index
      %163 = vector.load %arg2[%c0_71, %c0_72, %c0_73] : memref<1x8x32xf32, #tpu.memory_space<vmem>>, vector<1x8x32xf32>
      %164 = vector.shape_cast %163 : vector<1x8x32xf32> to vector<8x32xf32>
      %c0_74 = arith.constant 0 : index
      %c0_75 = arith.constant 0 : index
      %165 = vector.load %arg4[%c0_74, %c0_75] : memref<1x32xf32, #tpu.memory_space<vmem>>, vector<1x32xf32>
      %c0_76 = arith.constant 0 : index
      %c0_77 = arith.constant 0 : index
      %166 = vector.load %arg5[%c0_76, %c0_77] : memref<1x32xf32, #tpu.memory_space<vmem>>, vector<1x32xf32>
      %cst_78 = arith.constant dense<0.000000e+00> : vector<8xf32>
      %167 = vector.multi_reduction <add>, %164, %cst_78 [1] : vector<8x32xf32> to vector<8xf32>
      %168 = vector.shape_cast %167 : vector<8xf32> to vector<8x1xf32>
      %cst_79 = arith.constant 3.200000e+01 : f32
      %169 = vector.broadcast %cst_79 : f32 to vector<8x1xf32>
      %170 = arith.divf %168, %169 : vector<8x1xf32>
      %171 = vector.broadcast %170 : vector<8x1xf32> to vector<8x32xf32>
      %172 = arith.subf %164, %171 : vector<8x32xf32>
      %173 = arith.mulf %172, %172 : vector<8x32xf32>
      %cst_80 = arith.constant dense<0.000000e+00> : vector<8xf32>
      %174 = vector.multi_reduction <add>, %173, %cst_80 [1] : vector<8x32xf32> to vector<8xf32>
      %175 = vector.shape_cast %174 : vector<8xf32> to vector<8x1xf32>
      %cst_81 = arith.constant 3.200000e+01 : f32
      %176 = vector.broadcast %cst_81 : f32 to vector<8x1xf32>
      %177 = arith.divf %175, %176 : vector<8x1xf32>
      %178 = vector.broadcast %170 : vector<8x1xf32> to vector<8x32xf32>
      %179 = arith.subf %164, %178 : vector<8x32xf32>
      %cst_82 = arith.constant 9.99999996E-13 : f32
      %180 = vector.broadcast %cst_82 : f32 to vector<8x1xf32>
      %181 = arith.addf %177, %180 : vector<8x1xf32>
      %182 = math.rsqrt %181 : vector<8x1xf32>
      %183 = vector.broadcast %182 : vector<8x1xf32> to vector<8x32xf32>
      %184 = arith.mulf %179, %183 : vector<8x32xf32>
      %185 = vector.broadcast %165 : vector<1x32xf32> to vector<8x32xf32>
      %186 = arith.mulf %184, %185 : vector<8x32xf32>
      %187 = vector.broadcast %166 : vector<1x32xf32> to vector<8x32xf32>
      %188 = arith.addf %186, %187 : vector<8x32xf32>
      %c0_83 = arith.constant 0 : index
      %c0_84 = arith.constant 0 : index
      %189 = vector.load %arg23[%c0_83, %c0_84] : memref<8x32xf32, #tpu.memory_space<vmem>>, vector<8x32xf32>
      tpu.vector_store %arg23[%c0_83, %c0_84], %188 {strides = array<i32>} : memref<8x32xf32, #tpu.memory_space<vmem>>, vector<8x32xf32>,
    } else {
    }
    %c0 = arith.constant 0 : index
    %c0_1 = arith.constant 0 : index
    %3 = vector.load %arg23[%c0, %c0_1] : memref<8x32xf32, #tpu.memory_space<vmem>>, vector<8x32xf32>
    %c0_2 = arith.constant 0 : index
    %c0_3 = arith.constant 0 : index
    %c0_4 = arith.constant 0 : index
    %4 = vector.load %arg3[%c0_2, %c0_3, %c0_4] : memref<1x1x8xf32, #tpu.memory_space<vmem>>, vector<1x1x8xf32>
    %5 = vector.shape_cast %4 : vector<1x1x8xf32> to vector<1x8xf32>
    %c0_5 = arith.constant 0 : index
    %c0_6 = arith.constant 0 : index
    %c0_7 = arith.constant 0 : index
    %6 = vector.load %arg6[%c0_5, %c0_6, %c0_7] : memref<1x32x96xf32, #tpu.memory_space<vmem>>, vector<1x32x96xf32>
    %7 = vector.shape_cast %6 : vector<1x32x96xf32> to vector<32x96xf32>
    %c0_8 = arith.constant 0 : index
    %c0_9 = arith.constant 0 : index
    %c0_10 = arith.constant 0 : index
    %8 = vector.load %arg7[%c0_8, %c0_9, %c0_10] : memref<1x1x96xf32, #tpu.memory_space<vmem>>, vector<1x1x96xf32>
    %9 = vector.shape_cast %8 : vector<1x1x96xf32> to vector<1x96xf32>
    %c0_11 = arith.constant 0 : index
    %c0_12 = arith.constant 0 : index
    %c0_13 = arith.constant 0 : index
    %10 = vector.load %arg8[%c0_11, %c0_12, %c0_13] : memref<1x32x32xf32, #tpu.memory_space<vmem>>, vector<1x32x32xf32>
    %11 = vector.shape_cast %10 : vector<1x32x32xf32> to vector<32x32xf32>
    %c0_14 = arith.constant 0 : index
    %c0_15 = arith.constant 0 : index
    %c0_16 = arith.constant 0 : index
    %12 = vector.load %arg9[%c0_14, %c0_15, %c0_16] : memref<1x1x32xf32, #tpu.memory_space<vmem>>, vector<1x1x32xf32>
    %13 = vector.shape_cast %12 : vector<1x1x32xf32> to vector<1x32xf32>
    %c0_17 = arith.constant 0 : index
    %c0_18 = arith.constant 0 : index
    %c0_19 = arith.constant 0 : index
    %14 = vector.load %arg10[%c0_17, %c0_18, %c0_19] : memref<1x1x32xf32, #tpu.memory_space<vmem>>, vector<1x1x32xf32>
    %15 = vector.shape_cast %14 : vector<1x1x32xf32> to vector<1x32xf32>
    %c0_20 = arith.constant 0 : index
    %c0_21 = arith.constant 0 : index
    %c0_22 = arith.constant 0 : index
    %16 = vector.load %arg11[%c0_20, %c0_21, %c0_22] : memref<1x1x32xf32, #tpu.memory_space<vmem>>, vector<1x1x32xf32>
    %17 = vector.shape_cast %16 : vector<1x1x32xf32> to vector<1x32xf32>
    %c0_23 = arith.constant 0 : index
    %c0_24 = arith.constant 0 : index
    %c0_25 = arith.constant 0 : index
    %18 = vector.load %arg12[%c0_23, %c0_24, %c0_25] : memref<1x32x64xf32, #tpu.memory_space<vmem>>, vector<1x32x64xf32>
    %19 = vector.shape_cast %18 : vector<1x32x64xf32> to vector<32x64xf32>
    %c0_26 = arith.constant 0 : index
    %c0_27 = arith.constant 0 : index
    %c0_28 = arith.constant 0 : index
    %20 = vector.load %arg13[%c0_26, %c0_27, %c0_28] : memref<1x1x64xf32, #tpu.memory_space<vmem>>, vector<1x1x64xf32>
    %21 = vector.shape_cast %20 : vector<1x1x64xf32> to vector<1x64xf32>
    %c0_29 = arith.constant 0 : index
    %c0_30 = arith.constant 0 : index
    %c0_31 = arith.constant 0 : index
    %22 = vector.load %arg14[%c0_29, %c0_30, %c0_31] : memref<1x64x32xf32, #tpu.memory_space<vmem>>, vector<1x64x32xf32>
    %23 = vector.shape_cast %22 : vector<1x64x32xf32> to vector<64x32xf32>
    %c0_32 = arith.constant 0 : index
    %c0_33 = arith.constant 0 : index
    %c0_34 = arith.constant 0 : index
    %24 = vector.load %arg15[%c0_32, %c0_33, %c0_34] : memref<1x1x32xf32, #tpu.memory_space<vmem>>, vector<1x1x32xf32>
    %25 = vector.shape_cast %24 : vector<1x1x32xf32> to vector<1x32xf32>
    %c0_35 = arith.constant 0 : index
    %c0_36 = arith.constant 0 : index
    %c0_37 = arith.constant 0 : index
    %26 = vector.load %arg16[%c0_35, %c0_36, %c0_37] : memref<1x1x32xf32, #tpu.memory_space<vmem>>, vector<1x1x32xf32>
    %27 = vector.shape_cast %26 : vector<1x1x32xf32> to vector<1x32xf32>
    %c0_38 = arith.constant 0 : index
    %c0_39 = arith.constant 0 : index
    %c0_40 = arith.constant 0 : index
    %28 = vector.load %arg17[%c0_38, %c0_39, %c0_40] : memref<1x1x32xf32, #tpu.memory_space<vmem>>, vector<1x1x32xf32>
    %29 = vector.shape_cast %28 : vector<1x1x32xf32> to vector<1x32xf32>
    %30 = arith.truncf %3 : vector<8x32xf32> to vector<8x32xbf16>
    %31 = arith.truncf %7 : vector<32x96xf32> to vector<32x96xbf16>
    %cst = arith.constant dense<0.000000e+00> : vector<8x96xf32>
    %32 = tpu.matmul %30, %31, %cst {dimension_numbers = #tpu.dot_dimension_numbers<[1], [0], [0], [1], [0, 0, 1, 1], [], []>} : vector<8x32xbf16>, vector<32x96xbf16>, vector<8x96xf32> -> vector<8x96xf32>
    %33 = vector.broadcast %9 : vector<1x96xf32> to vector<8x96xf32>
    %34 = arith.addf %32, %33 : vector<8x96xf32>
    %35 = vector.extract_strided_slice %34 {offsets = [0, 0], sizes = [8, 32], strides = [1, 1]} : vector<8x96xf32> to vector<8x32xf32>
    %36 = vector.extract_strided_slice %34 {offsets = [0, 32], sizes = [8, 32], strides = [1, 1]} : vector<8x96xf32> to vector<8x32xf32>
    %37 = vector.extract_strided_slice %34 {offsets = [0, 64], sizes = [8, 32], strides = [1, 1]} : vector<8x96xf32> to vector<8x32xf32>
    %38 = vector.extract_strided_slice %35 {offsets = [0, 0], sizes = [8, 16], strides = [1, 1]} : vector<8x32xf32> to vector<8x16xf32>
    %39 = vector.extract_strided_slice %36 {offsets = [0, 0], sizes = [8, 16], strides = [1, 1]} : vector<8x32xf32> to vector<8x16xf32>
    %40 = vector.extract_strided_slice %37 {offsets = [0, 0], sizes = [8, 16], strides = [1, 1]} : vector<8x32xf32> to vector<8x16xf32>
    %41 = arith.truncf %38 : vector<8x16xf32> to vector<8x16xbf16>
    %42 = arith.truncf %39 : vector<8x16xf32> to vector<8x16xbf16>
    "tpu.trace_start"() <{level = 10 : i32, message = "qd,kd->qk"}> : () -> ()
    %cst_41 = arith.constant dense<0.000000e+00> : vector<8x8xf32>
    %43 = tpu.matmul %41, %42, %cst_41 {dimension_numbers = #tpu.dot_dimension_numbers<[1], [1], [0], [0], [0, 0, 1, 0], [], []>} : vector<8x16xbf16>, vector<8x16xbf16>, vector<8x8xf32> -> vector<8x8xf32>
    "tpu.trace_stop"() : () -> ()
    %cst_42 = arith.constant 2.500000e-01 : f32
    %44 = vector.broadcast %cst_42 : f32 to vector<8x8xf32>
    %45 = arith.mulf %43, %44 : vector<8x8xf32>
    %46 = vector.broadcast %5 : vector<1x8xf32> to vector<8x8xf32>
    %47 = arith.addf %45, %46 : vector<8x8xf32>
    %cst_43 = arith.constant dense<0xFF800000> : vector<8xf32>
    %48 = vector.multi_reduction <maximumf>, %47, %cst_43 [1] : vector<8x8xf32> to vector<8xf32>
    %49 = vector.shape_cast %48 : vector<8xf32> to vector<8x1xf32>
    %50 = vector.broadcast %49 : vector<8x1xf32> to vector<8x8xf32>
    %51 = arith.subf %47, %50 : vector<8x8xf32>
    %52 = math.exp %51 : vector<8x8xf32>
    %cst_44 = arith.constant dense<0.000000e+00> : vector<8xf32>
    %53 = vector.multi_reduction <add>, %52, %cst_44 [1] : vector<8x8xf32> to vector<8xf32>
    %54 = vector.shape_cast %53 : vector<8xf32> to vector<8x1xf32>
    %55 = tpu.reciprocal %54 {approx = true} : vector<8x1xf32> -> vector<8x1xf32>
    %56 = vector.broadcast %55 : vector<8x1xf32> to vector<8x8xf32>
    %57 = arith.mulf %52, %56 : vector<8x8xf32>
    %58 = arith.truncf %57 : vector<8x8xf32> to vector<8x8xbf16>
    %59 = arith.truncf %40 : vector<8x16xf32> to vector<8x16xbf16>
    %cst_45 = arith.constant dense<0.000000e+00> : vector<8x16xf32>
    %60 = tpu.matmul %58, %59, %cst_45 {dimension_numbers = #tpu.dot_dimension_numbers<[1], [0], [0], [1], [0, 0, 1, 1], [], []>} : vector<8x8xbf16>, vector<8x16xbf16>, vector<8x16xf32> -> vector<8x16xf32>
    %61 = vector.extract_strided_slice %35 {offsets = [0, 16], sizes = [8, 16], strides = [1, 1]} : vector<8x32xf32> to vector<8x16xf32>
    %62 = vector.extract_strided_slice %36 {offsets = [0, 16], sizes = [8, 16], strides = [1, 1]} : vector<8x32xf32> to vector<8x16xf32>
    %63 = vector.extract_strided_slice %37 {offsets = [0, 16], sizes = [8, 16], strides = [1, 1]} : vector<8x32xf32> to vector<8x16xf32>
    %64 = arith.truncf %61 : vector<8x16xf32> to vector<8x16xbf16>
    %65 = arith.truncf %62 : vector<8x16xf32> to vector<8x16xbf16>
    "tpu.trace_start"() <{level = 10 : i32, message = "qd,kd->qk"}> : () -> ()
    %cst_46 = arith.constant dense<0.000000e+00> : vector<8x8xf32>
    %66 = tpu.matmul %64, %65, %cst_46 {dimension_numbers = #tpu.dot_dimension_numbers<[1], [1], [0], [0], [0, 0, 1, 0], [], []>} : vector<8x16xbf16>, vector<8x16xbf16>, vector<8x8xf32> -> vector<8x8xf32>
    "tpu.trace_stop"() : () -> ()
    %cst_47 = arith.constant 2.500000e-01 : f32
    %67 = vector.broadcast %cst_47 : f32 to vector<8x8xf32>
    %68 = arith.mulf %66, %67 : vector<8x8xf32>
    %69 = vector.broadcast %5 : vector<1x8xf32> to vector<8x8xf32>
    %70 = arith.addf %68, %69 : vector<8x8xf32>
    %cst_48 = arith.constant dense<0xFF800000> : vector<8xf32>
    %71 = vector.multi_reduction <maximumf>, %70, %cst_48 [1] : vector<8x8xf32> to vector<8xf32>
    %72 = vector.shape_cast %71 : vector<8xf32> to vector<8x1xf32>
    %73 = vector.broadcast %72 : vector<8x1xf32> to vector<8x8xf32>
    %74 = arith.subf %70, %73 : vector<8x8xf32>
    %75 = math.exp %74 : vector<8x8xf32>
    %cst_49 = arith.constant dense<0.000000e+00> : vector<8xf32>
    %76 = vector.multi_reduction <add>, %75, %cst_49 [1] : vector<8x8xf32> to vector<8xf32>
    %77 = vector.shape_cast %76 : vector<8xf32> to vector<8x1xf32>
    %78 = tpu.reciprocal %77 {approx = true} : vector<8x1xf32> -> vector<8x1xf32>
    %79 = vector.broadcast %78 : vector<8x1xf32> to vector<8x8xf32>
    %80 = arith.mulf %75, %79 : vector<8x8xf32>
    %81 = arith.truncf %80 : vector<8x8xf32> to vector<8x8xbf16>
    %82 = arith.truncf %63 : vector<8x16xf32> to vector<8x16xbf16>
    %cst_50 = arith.constant dense<0.000000e+00> : vector<8x16xf32>
    %83 = tpu.matmul %81, %82, %cst_50 {dimension_numbers = #tpu.dot_dimension_numbers<[1], [0], [0], [1], [0, 0, 1, 1], [], []>} : vector<8x8xbf16>, vector<8x16xbf16>, vector<8x16xf32> -> vector<8x16xf32>
    %84 = tpu.concatenate %60, %83 in 1 : vector<8x16xf32>, vector<8x16xf32> -> vector<8x32xf32>
    %85 = arith.truncf %84 : vector<8x32xf32> to vector<8x32xbf16>
    %86 = arith.truncf %11 : vector<32x32xf32> to vector<32x32xbf16>
    %cst_51 = arith.constant dense<0.000000e+00> : vector<8x32xf32>
    %87 = tpu.matmul %85, %86, %cst_51 {dimension_numbers = #tpu.dot_dimension_numbers<[1], [0], [0], [1], [0, 0, 1, 1], [], []>} : vector<8x32xbf16>, vector<32x32xbf16>, vector<8x32xf32> -> vector<8x32xf32>
    %88 = vector.broadcast %13 : vector<1x32xf32> to vector<8x32xf32>
    %89 = arith.addf %87, %88 : vector<8x32xf32>
    %90 = arith.addf %89, %3 : vector<8x32xf32>
    %cst_52 = arith.constant dense<0.000000e+00> : vector<8xf32>
    %91 = vector.multi_reduction <add>, %90, %cst_52 [1] : vector<8x32xf32> to vector<8xf32>
    %92 = vector.shape_cast %91 : vector<8xf32> to vector<8x1xf32>
    %cst_53 = arith.constant 3.200000e+01 : f32
    %93 = vector.broadcast %cst_53 : f32 to vector<8x1xf32>
    %94 = arith.divf %92, %93 : vector<8x1xf32>
    %95 = vector.broadcast %94 : vector<8x1xf32> to vector<8x32xf32>
    %96 = arith.subf %90, %95 : vector<8x32xf32>
    %97 = arith.mulf %96, %96 : vector<8x32xf32>
    %cst_54 = arith.constant dense<0.000000e+00> : vector<8xf32>
    %98 = vector.multi_reduction <add>, %97, %cst_54 [1] : vector<8x32xf32> to vector<8xf32>
    %99 = vector.shape_cast %98 : vector<8xf32> to vector<8x1xf32>
    %cst_55 = arith.constant 3.200000e+01 : f32
    %100 = vector.broadcast %cst_55 : f32 to vector<8x1xf32>
    %101 = arith.divf %99, %100 : vector<8x1xf32>
    %102 = vector.broadcast %94 : vector<8x1xf32> to vector<8x32xf32>
    %103 = arith.subf %90, %102 : vector<8x32xf32>
    %cst_56 = arith.constant 9.99999996E-13 : f32
    %104 = vector.broadcast %cst_56 : f32 to vector<8x1xf32>
    %105 = arith.addf %101, %104 : vector<8x1xf32>
    %106 = math.rsqrt %105 : vector<8x1xf32>
    %107 = vector.broadcast %106 : vector<8x1xf32> to vector<8x32xf32>
    %108 = arith.mulf %103, %107 : vector<8x32xf32>
    %109 = vector.broadcast %15 : vector<1x32xf32> to vector<8x32xf32>
    %110 = arith.mulf %108, %109 : vector<8x32xf32>
    %111 = vector.broadcast %17 : vector<1x32xf32> to vector<8x32xf32>
    %112 = arith.addf %110, %111 : vector<8x32xf32>
    %113 = arith.truncf %112 : vector<8x32xf32> to vector<8x32xbf16>
    %114 = arith.truncf %19 : vector<32x64xf32> to vector<32x64xbf16>
    %cst_57 = arith.constant dense<0.000000e+00> : vector<8x64xf32>
    %115 = tpu.matmul %113, %114, %cst_57 {dimension_numbers = #tpu.dot_dimension_numbers<[1], [0], [0], [1], [0, 0, 1, 1], [], []>} : vector<8x32xbf16>, vector<32x64xbf16>, vector<8x64xf32> -> vector<8x64xf32>
    %116 = vector.broadcast %21 : vector<1x64xf32> to vector<8x64xf32>
    %117 = arith.addf %115, %116 : vector<8x64xf32>
    %118 = arith.mulf %117, %117 : vector<8x64xf32>
    %119 = arith.mulf %117, %118 : vector<8x64xf32>
    %cst_58 = arith.constant 4.471500e-02 : f32
    %120 = vector.broadcast %cst_58 : f32 to vector<8x64xf32>
    %121 = arith.mulf %120, %119 : vector<8x64xf32>
    %122 = arith.addf %117, %121 : vector<8x64xf32>
    %cst_59 = arith.constant 0.797884583 : f32
    %123 = vector.broadcast %cst_59 : f32 to vector<8x64xf32>
    %124 = arith.mulf %123, %122 : vector<8x64xf32>
    %125 = math.tanh %124 : vector<8x64xf32>
    %cst_60 = arith.constant 1.000000e+00 : f32
    %126 = vector.broadcast %cst_60 : f32 to vector<8x64xf32>
    %127 = arith.addf %126, %125 : vector<8x64xf32>
    %cst_61 = arith.constant 5.000000e-01 : f32
    %128 = vector.broadcast %cst_61 : f32 to vector<8x64xf32>
    %129 = arith.mulf %128, %127 : vector<8x64xf32>
    %130 = arith.mulf %117, %129 : vector<8x64xf32>
    %131 = arith.truncf %130 : vector<8x64xf32> to vector<8x64xbf16>
    %132 = arith.truncf %23 : vector<64x32xf32> to vector<64x32xbf16>
    %cst_62 = arith.constant dense<0.000000e+00> : vector<8x32xf32>
    %133 = tpu.matmul %131, %132, %cst_62 {dimension_numbers = #tpu.dot_dimension_numbers<[1], [0], [0], [1], [0, 0, 1, 1], [], []>} : vector<8x64xbf16>, vector<64x32xbf16>, vector<8x32xf32> -> vector<8x32xf32>
    %134 = vector.broadcast %25 : vector<1x32xf32> to vector<8x32xf32>
    %135 = arith.addf %133, %134 : vector<8x32xf32>
    %136 = arith.addf %135, %112 : vector<8x32xf32>
    %cst_63 = arith.constant dense<0.000000e+00> : vector<8xf32>
    %137 = vector.multi_reduction <add>, %136, %cst_63 [1] : vector<8x32xf32> to vector<8xf32>
    %138 = vector.shape_cast %137 : vector<8xf32> to vector<8x1xf32>
    %cst_64 = arith.constant 3.200000e+01 : f32
    %139 = vector.broadcast %cst_64 : f32 to vector<8x1xf32>
    %140 = arith.divf %138, %139 : vector<8x1xf32>
    %141 = vector.broadcast %140 : vector<8x1xf32> to vector<8x32xf32>
    %142 = arith.subf %136, %141 : vector<8x32xf32>
    %143 = arith.mulf %142, %142 : vector<8x32xf32>
    %cst_65 = arith.constant dense<0.000000e+00> : vector<8xf32>
    %144 = vector.multi_reduction <add>, %143, %cst_65 [1] : vector<8x32xf32> to vector<8xf32>
    %145 = vector.shape_cast %144 : vector<8xf32> to vector<8x1xf32>
    %cst_66 = arith.constant 3.200000e+01 : f32
    %146 = vector.broadcast %cst_66 : f32 to vector<8x1xf32>
    %147 = arith.divf %145, %146 : vector<8x1xf32>
    %148 = vector.broadcast %140 : vector<8x1xf32> to vector<8x32xf32>
    %149 = arith.subf %136, %148 : vector<8x32xf32>
    %cst_67 = arith.constant 9.99999996E-13 : f32
    %150 = vector.broadcast %cst_67 : f32 to vector<8x1xf32>
    %151 = arith.addf %147, %150 : vector<8x1xf32>
    %152 = math.rsqrt %151 : vector<8x1xf32>
    %153 = vector.broadcast %152 : vector<8x1xf32> to vector<8x32xf32>
    %154 = arith.mulf %149, %153 : vector<8x32xf32>
    %155 = vector.broadcast %27 : vector<1x32xf32> to vector<8x32xf32>
    %156 = arith.mulf %154, %155 : vector<8x32xf32>
    %157 = vector.broadcast %29 : vector<1x32xf32> to vector<8x32xf32>
    %158 = arith.addf %156, %157 : vector<8x32xf32>
    %c0_68 = arith.constant 0 : index
    %c0_69 = arith.constant 0 : index
    %159 = vector.load %arg23[%c0_68, %c0_69] : memref<8x32xf32, #tpu.memory_space<vmem>>, vector<8x32xf32>
    tpu.vector_store %arg23[%c0_68, %c0_69], %158 {strides = array<i32>} : memref<8x32xf32, #tpu.memory_space<vmem>>, vector<8x32xf32>,
    %c1_i32 = arith.constant 1 : i32
    %160 = arith.cmpi eq, %arg1, %c1_i32 : i32
    %161 = arith.extui %160 : i1 to i32
    %c0_i32_70 = arith.constant 0 : i32
    %162 = arith.cmpi ne, %161, %c0_i32_70 : i32
    scf.if %162 {
      %c0_71 = arith.constant 0 : index
      %c0_72 = arith.constant 0 : index
      %163 = vector.load %arg23[%c0_71, %c0_72] : memref<8x32xf32, #tpu.memory_space<vmem>>, vector<8x32xf32>
      %c0_73 = arith.constant 0 : index
      %c0_74 = arith.constant 0 : index
      %164 = vector.load %arg18[%c0_73, %c0_74] : memref<32x32xf32, #tpu.memory_space<vmem>>, vector<32x32xf32>
      %165 = arith.truncf %163 : vector<8x32xf32> to vector<8x32xbf16>
      %166 = arith.truncf %164 : vector<32x32xf32> to vector<32x32xbf16>
      %cst_75 = arith.constant dense<0.000000e+00> : vector<8x32xf32>
      %167 = tpu.matmul %165, %166, %cst_75 {dimension_numbers = #tpu.dot_dimension_numbers<[1], [0], [0], [1], [0, 0, 1, 1], [], []>} : vector<8x32xbf16>, vector<32x32xbf16>, vector<8x32xf32> -> vector<8x32xf32>
      %c0_76 = arith.constant 0 : index
      %c0_77 = arith.constant 0 : index
      %168 = vector.load %arg19[%c0_76, %c0_77] : memref<1x32xf32, #tpu.memory_space<vmem>>, vector<1x32xf32>
      %169 = vector.broadcast %168 : vector<1x32xf32> to vector<8x32xf32>
      %170 = arith.addf %167, %169 : vector<8x32xf32>
      %171 = arith.addf %163, %170 : vector<8x32xf32>
      %c0_78 = arith.constant 0 : index
      %c0_79 = arith.constant 0 : index
      %172 = vector.load %arg20[%c0_78, %c0_79] : memref<32x128xf32, #tpu.memory_space<vmem>>, vector<32x128xf32>
      %173 = arith.truncf %171 : vector<8x32xf32> to vector<8x32xbf16>
      %174 = arith.truncf %172 : vector<32x128xf32> to vector<32x128xbf16>
      %cst_80 = arith.constant dense<0.000000e+00> : vector<8x128xf32>
      %175 = tpu.matmul %173, %174, %cst_80 {dimension_numbers = #tpu.dot_dimension_numbers<[1], [0], [0], [1], [0, 0, 1, 1], [], []>} : vector<8x32xbf16>, vector<32x128xbf16>, vector<8x128xf32> -> vector<8x128xf32>
      %c0_81 = arith.constant 0 : index
      %c0_82 = arith.constant 0 : index
      %176 = vector.load %arg21[%c0_81, %c0_82] : memref<1x128xf32, #tpu.memory_space<vmem>>, vector<1x128xf32>
      %177 = vector.broadcast %176 : vector<1x128xf32> to vector<8x128xf32>
      %178 = arith.addf %175, %177 : vector<8x128xf32>
      %c0_83 = arith.constant 0 : index
      %c0_84 = arith.constant 0 : index
      %c0_85 = arith.constant 0 : index
      %179 = vector.load %arg22[%c0_83, %c0_84, %c0_85] : memref<1x8x128xf32, #tpu.memory_space<vmem>>, vector<1x8x128xf32>
      %180 = vector.shape_cast %179 : vector<1x8x128xf32> to vector<8x128xf32>
      %181 = vector.shape_cast %178 : vector<8x128xf32> to vector<1x8x128xf32>
      tpu.vector_store %arg22[%c0_83, %c0_84, %c0_85], %181 {strides = array<i32>} : memref<1x8x128xf32, #tpu.memory_space<vmem>>, vector<1x8x128xf32>,
    } else {
    }
    return
  }
  func.func @transform_0(%arg0: i32, %arg1: i32) -> (i32, i32, i32) {
    %c0_i32 = arith.constant 0 : i32
    %c0_i32_0 = arith.constant 0 : i32
    %c0_i32_1 = arith.constant 0 : i32
    return %arg0, %c0_i32, %c0_i32_0 : i32, i32, i32
  }
  func.func @transform_1(%arg0: i32, %arg1: i32) -> (i32, i32, i32) {
    %c0_i32 = arith.constant 0 : i32
    %c0_i32_0 = arith.constant 0 : i32
    %c0_i32_1 = arith.constant 0 : i32
    return %arg0, %c0_i32, %c0_i32_0 : i32, i32, i32
  }
  func.func @transform_2(%arg0: i32, %arg1: i32) -> (i32, i32) {
    %c0_i32 = arith.constant 0 : i32
    %c0_i32_0 = arith.constant 0 : i32
    %c0_i32_1 = arith.constant 0 : i32
    return %c0_i32, %c0_i32_0 : i32, i32
  }
  func.func @transform_3(%arg0: i32, %arg1: i32) -> (i32, i32) {
    %c0_i32 = arith.constant 0 : i32
    %c0_i32_0 = arith.constant 0 : i32
    %c0_i32_1 = arith.constant 0 : i32
    return %c0_i32, %c0_i32_0 : i32, i32
  }
  func.func @transform_4(%arg0: i32, %arg1: i32) -> (i32, i32, i32) {
    %c0_i32 = arith.constant 0 : i32
    %c0_i32_0 = arith.constant 0 : i32
    %c0_i32_1 = arith.constant 0 : i32
    return %arg1, %c0_i32, %c0_i32_0 : i32, i32, i32
  }
  func.func @transform_5(%arg0: i32, %arg1: i32) -> (i32, i32, i32) {
    %c0_i32 = arith.constant 0 : i32
    %c0_i32_0 = arith.constant 0 : i32
    %c0_i32_1 = arith.constant 0 : i32
    return %arg1, %c0_i32, %c0_i32_0 : i32, i32, i32
  }
  func.func @transform_6(%arg0: i32, %arg1: i32) -> (i32, i32, i32) {
    %c0_i32 = arith.constant 0 : i32
    %c0_i32_0 = arith.constant 0 : i32
    %c0_i32_1 = arith.constant 0 : i32
    return %arg1, %c0_i32, %c0_i32_0 : i32, i32, i32
  }
  func.func @transform_7(%arg0: i32, %arg1: i32) -> (i32, i32, i32) {
    %c0_i32 = arith.constant 0 : i32
    %c0_i32_0 = arith.constant 0 : i32
    %c0_i32_1 = arith.constant 0 : i32
    return %arg1, %c0_i32, %c0_i32_0 : i32, i32, i32
  }
  func.func @transform_8(%arg0: i32, %arg1: i32) -> (i32, i32, i32) {
    %c0_i32 = arith.constant 0 : i32
    %c0_i32_0 = arith.constant 0 : i32
    %c0_i32_1 = arith.constant 0 : i32
    return %arg1, %c0_i32, %c0_i32_0 : i32, i32, i32
  }
  func.func @transform_9(%arg0: i32, %arg1: i32) -> (i32, i32, i32) {
    %c0_i32 = arith.constant 0 : i32
    %c0_i32_0 = arith.constant 0 : i32
    %c0_i32_1 = arith.constant 0 : i32
    return %arg1, %c0_i32, %c0_i32_0 : i32, i32, i32
  }
  func.func @transform_10(%arg0: i32, %arg1: i32) -> (i32, i32, i32) {
    %c0_i32 = arith.constant 0 : i32
    %c0_i32_0 = arith.constant 0 : i32
    %c0_i32_1 = arith.constant 0 : i32
    return %arg1, %c0_i32, %c0_i32_0 : i32, i32, i32
  }
  func.func @transform_11(%arg0: i32, %arg1: i32) -> (i32, i32, i32) {
    %c0_i32 = arith.constant 0 : i32
    %c0_i32_0 = arith.constant 0 : i32
    %c0_i32_1 = arith.constant 0 : i32
    return %arg1, %c0_i32, %c0_i32_0 : i32, i32, i32
  }
  func.func @transform_12(%arg0: i32, %arg1: i32) -> (i32, i32, i32) {
    %c0_i32 = arith.constant 0 : i32
    %c0_i32_0 = arith.constant 0 : i32
    %c0_i32_1 = arith.constant 0 : i32
    return %arg1, %c0_i32, %c0_i32_0 : i32, i32, i32
  }
  func.func @transform_13(%arg0: i32, %arg1: i32) -> (i32, i32, i32) {
    %c0_i32 = arith.constant 0 : i32
    %c0_i32_0 = arith.constant 0 : i32
    %c0_i32_1 = arith.constant 0 : i32
    return %arg1, %c0_i32, %c0_i32_0 : i32, i32, i32
  }
  func.func @transform_14(%arg0: i32, %arg1: i32) -> (i32, i32, i32) {
    %c0_i32 = arith.constant 0 : i32
    %c0_i32_0 = arith.constant 0 : i32
    %c0_i32_1 = arith.constant 0 : i32
    return %arg1, %c0_i32, %c0_i32_0 : i32, i32, i32
  }
  func.func @transform_15(%arg0: i32, %arg1: i32) -> (i32, i32, i32) {
    %c0_i32 = arith.constant 0 : i32
    %c0_i32_0 = arith.constant 0 : i32
    %c0_i32_1 = arith.constant 0 : i32
    return %arg1, %c0_i32, %c0_i32_0 : i32, i32, i32
  }
  func.func @transform_16(%arg0: i32, %arg1: i32) -> (i32, i32) {
    %c0_i32 = arith.constant 0 : i32
    %c0_i32_0 = arith.constant 0 : i32
    %c0_i32_1 = arith.constant 0 : i32
    return %c0_i32, %c0_i32_0 : i32, i32
  }
  func.func @transform_17(%arg0: i32, %arg1: i32) -> (i32, i32) {
    %c0_i32 = arith.constant 0 : i32
    %c0_i32_0 = arith.constant 0 : i32
    %c0_i32_1 = arith.constant 0 : i32
    return %c0_i32, %c0_i32_0 : i32, i32
  }
  func.func @transform_18(%arg0: i32, %arg1: i32) -> (i32, i32) {
    %c0_i32 = arith.constant 0 : i32
    %c0_i32_0 = arith.constant 0 : i32
    %c0_i32_1 = arith.constant 0 : i32
    return %c0_i32, %c0_i32_0 : i32, i32
  }
  func.func @transform_19(%arg0: i32, %arg1: i32) -> (i32, i32) {
    %c0_i32 = arith.constant 0 : i32
    %c0_i32_0 = arith.constant 0 : i32
    %c0_i32_1 = arith.constant 0 : i32
    return %c0_i32, %c0_i32_0 : i32, i32
  }
  func.func @transform_20(%arg0: i32, %arg1: i32) -> (i32, i32, i32) {
    %c0_i32 = arith.constant 0 : i32
    %c0_i32_0 = arith.constant 0 : i32
    %c0_i32_1 = arith.constant 0 : i32
    return %arg0, %c0_i32, %c0_i32_0 : i32, i32, i32
  }
}

</mosaic_0001>

<bundles_post_ra>
// kernel: bert_model_forward.1
= control target key start
LH: loop header
LB: loop body
LE: loop exit
PB: predicated region body
PF: predicated region fallthrough
CT: control target
= control target key end

     0   :  { %s1741_s22 = smov 0   ;;  %s1743_s23 = smov 0   ;;  %s1998_s0 = inlined_call_operand.vmem [shape: f32[2,8,32], index: 0, kind: input, shape index: {}]   ;;  %s1999_s1 = inlined_call_operand.vmem [shape: f32[2,1,8], index: 1, kind: input, shape index: {}]   ;;  %s2000_s2 = inlined_call_operand.vmem [shape: f32[1,32], index: 2, kind: input, shape index: {}]   ;;  %s2001_s3 = inlined_call_operand.vmem [shape: f32[1,32], index: 3, kind: input, shape index: {}]   ;;  %s2002_s4 = inlined_call_operand.vmem [shape: f32[2,32,96], index: 4, kind: input, shape index: {}]   ;;  %s2003_s5 = inlined_call_operand.vmem [shape: f32[2,1,96], index: 5, kind: input, shape index: {}]   ;;  %s2004_s6 = inlined_call_operand.vmem [shape: f32[2,32,32], index: 6, kind: input, shape index: {}]   ;;  %s2005_s7 = inlined_call_operand.vmem [shape: f32[2,1,32], index: 7, kind: input, shape index: {}]   ;;  %s2006_s8 = inlined_call_operand.vmem [shape: f32[2,1,32], index: 8, kind: input, shape index: {}]   ;;  %s2007_s9 = inlined_call_operand.vmem [shape: f32[2,1,32], index: 9, kind: input, shape index: {}]   ;;  %s2008_s10 = inlined_call_operand.vmem [shape: f32[2,32,64], index: 10, kind: input, shape index: {}]   ;;  %s2009_s11 = inlined_call_operand.vmem [shape: f32[2,1,64], index: 11, kind: input, shape index: {}]   ;;  %s2010_s12 = inlined_call_operand.vmem [shape: f32[2,64,32], index: 12, kind: input, shape index: {}]   ;;  %s2011_s13 = inlined_call_operand.vmem [shape: f32[2,1,32], index: 13, kind: input, shape index: {}]   ;;  %s2012_s14 = inlined_call_operand.vmem [shape: f32[2,1,32], index: 14, kind: input, shape index: {}]   ;;  %s2013_s15 = inlined_call_operand.vmem [shape: f32[2,1,32], index: 15, kind: input, shape index: {}]   ;;  %s2014_s16 = inlined_call_operand.vmem [shape: f32[32,32], index: 16, kind: input, shape index: {}]   ;;  %s2015_s17 = inlined_call_operand.vmem [shape: f32[1,32], index: 17, kind: input, shape index: {}]   ;;  %s2016_s18 = inlined_call_operand.vmem [shape: f32[32,128], index: 18, kind: input, shape index: {}]   ;;  %s2017_s19 = inlined_call_operand.vmem [shape: f32[1,128], index: 19, kind: input, shape index: {}]   ;;  %s2018_s20 = inlined_call_operand.vmem [shape: f32[2,8,128], index: 20, kind: output, shape index: {}]  }
   0x1   :  { %2026 = sst [smem:[#allocation10_spill]] %s1998_s0  ;;  %s1745_s24 = smov 0  }
   0x2   :  { %2027 = sst [smem:[#allocation11_spill]] %s1999_s1  ;;  %s1739_s1 = smov 0  }
   0x3   :  { %2028 = sst [smem:[#allocation12_spill]] %s2000_s2  ;;  %s1747_s2 = smov 0  }
   0x4   :  { %2029 = sst [smem:[#allocation13_spill]] %s2001_s3 }
   0x5   :  { %2030 = sst [smem:[#allocation14_spill]] %s2002_s4 }
   0x6   :  { %2031 = sst [smem:[#allocation15_spill]] %s2004_s6 }
   0x7   :  { %2032 = sst [smem:[#allocation16_spill]] %s2008_s10 }
   0x8   :  { %2033 = sst [smem:[#allocation17_spill]] %s2009_s11 }
   0x9   :  { %2034 = sst [smem:[#allocation18_spill]] %s2013_s15 }
   0xa   :  { %2035 = sst [smem:[#allocation19_spill]] %s2014_s16 }
   0xb   :  { %2036 = sst [smem:[#allocation20_spill]] %s2015_s17 }
   0xc   :  { %2037 = sst [smem:[#allocation21_spill]] %s2016_s18 }
   0xd   :  { %2038 = sst [smem:[#allocation22_spill]] %s2017_s19 }
   0xe   :  { %2039 = sst [smem:[#allocation23_spill]] %s2018_s20 }
   0xf LB: > { %2040 = sst [smem:[#allocation3_spill]] %s1608_s1  ;;  %s39_s25 = sadd.s32 1, %s1616_s23  ;;  %s1624_s2 = sphi %s1747_s2, %s30_s2   ;;  %s1620_s24 = sphi %s1745_s24, %s2078_s24   ;;  %s1616_s23 = sphi %s1743_s23, %s2077_s23   ;;  %s1612_s22 = sphi %s1741_s22, %s2076_s22   ;;  %s1608_s1 = sphi %s1739_s1, %s2075_s1  }
  0x10   : > { %2041 = sst [smem:[#allocation4_spill]] %s1616_s23  ;;  %s42_s3 = sadd.s32 1, %s1620_s24 }
  0x11   : > { %2042 = sst [smem:[#allocation5_spill]] %s1620_s24  ;;  %p40_p0 = scmp.ge.s32.totalorder %s39_s25, 2 }
  0x12   : > { %2043 = sst [smem:[#allocation6_spill]] %s1624_s2  ;;  %p1476_p1 = scmp.ge.s32.totalorder %s1624_s2, 1 }
  0x13   : > { %p685_p2 = scmp.lt.s32.totalorder %s1624_s2, 5  ;;  %s2080_s25 = smov (%p40_p0, %s39_s25), 0 }
  0x14   : > { %2044 = sst [smem:[#allocation7_spill]] %s2080_s25  ;;  %s2082_s3 = smov (!%p40_p0, %s42_s3), %s1620_s24 }
  0x15   : > { %p686_p3 = pnand %p1476_p1, %p685_p2  ;;  %p44_p4 = scmp.ge.s32.totalorder %s2082_s3, 2 }
  0x17   : > { %s2084_s3 = smov (%p44_p4, %s2082_s3), 0  ;;  %689 = sbr.rel (%p686_p3) target bundleno = 2449 (0x991), region = 100 }
  0x18   : > { %2045 = sst [smem:[#allocation8_spill]] %s2084_s3 }
  0x1c   : > { %p788_p5 = scmp.lt.s32.totalorder %s1612_s22, 1  ;;  %p795_p6 = scmp.lt.s32.totalorder %s1608_s1, 1 }
  0x1d   : > { %s2048_s3 = sld [smem:[#allocation10_spill]] }
  0x1e   : > { %s2086_s22 = smov (!%p788_p5, %s1612_s22), 1  ;;  %s2049_s19 = sld [smem:[#allocation14_spill]] }
  0x1f   : > { %2046 = sst [smem:[#allocation9_spill]] %s2086_s22  ;;  %s1477_s27 = sshll.u32 %s2086_s22, 3 }
  0x20   : > { %s1775_s26 = scalar_select %p795_p6, %s1608_s1, 1 }
  0x21   : > { %s2050_s6 = sld [smem:[#allocation15_spill]] }
  0x22   : > { %s1501_s24 = sshll.u32 %s1775_s26, 5  ;;  %s2051_s10 = sld [smem:[#allocation16_spill]] }
  0x23   : > { %s791_s25 = scalar_lea.vmem %s2048_s3, %s1477_s27  ;;  %s832_s0 = scalar_lea.vmem %s2011_s13, %s1775_s26 }
  0x24   : > { %s1789_s17 = scalar_lea.vmem %s2049_s19, %s1501_s24  ;;  %s835_s22 = scalar_lea.vmem %s2012_s14, %s1775_s26 }
  0x25   : > { %s2053_s2 = sld [smem:[#allocation18_spill]] }
  0x26   : > { %s2054_s1 = sld [smem:[#allocation23_spill]] }
  0x27   : > { %s1798_s28 = scalar_lea.vmem %s2050_s6, %s1501_s24  ;;  %s1504_s6 = sshll.u32 %s1775_s26, 6 }
  0x28   : > { %s1815_s18 = scalar_lea.vmem %s2051_s10, %s1501_s24  ;;  %s1829_s30 = scalar_lea.vmem %s2010_s12, %s1504_s6 }
  0x29   : > { %s2055_s4 = sld [smem:[#allocation3_spill]] }
  0x2b   : > { %s838_s10 = scalar_lea.vmem %s2053_s2, %s1775_s26 }
  0x2c   : > { %s1842_s11 = scalar_lea.vmem %s2054_s1, %s1477_s27 }
  0x2f   : > { %p1487_p7 = scmp.ne.s32.totalorder %s2055_s4, 0 }
  0x30   : > { %s2057_s29 = sld [smem:[#allocation13_spill]] (!%p1487_p7) }
  0x31   : > { %847 = sbr.rel (%p1487_p7) target bundleno = 324 (0x144), region = 104 }
  0x36   : > { %v848_v0 = vld [vmem:[%s791_s25] sm:$0xff]  ;;  %vm851_vm0 = vcmask 261120   ;;  %v1626_v2 = vmov 32.0   ;;  %s2056_s25 = sld [smem:[#allocation12_spill]] }
  0x37   : > { %v852_v1 = vsel %vm851_vm0, %v848_v0, 0.0  ;;  %1555 = vrcp.f32 %v1626_v2  ;;  %v1554_v25 = vld [vmem:[%s2057_s29] ss:$0 sm:$0xff] }
  0x38   : > { %853 = vadd.xlane.f32.xlu0 %v852_v1 }
  0x3c   : > { %v1553_v23 = vld [vmem:[%s2056_s25] ss:$0 sm:$0xff] }
  0x3d   : > { %v1556_v3 = vpop.eup %1555 }
  0x3e   : > { %v856_v4 = vmul.f32 32.0, %v1556_v3  ;;  %vm860_vm1 = vweird.f32 %v1556_v3 }
  0x40   : > { %v857_v5 = vsub.f32 1.0, %v856_v4 }
  0x42   : > { %v858_v6 = vmul.f32 %v1556_v3, %v857_v5 }
  0x44   : > { %v859_v7 = vadd.f32 %v1556_v3, %v858_v6 }
  0x46   : > { %v861_v8 = vsel %vm860_vm1, %v1556_v3, %v859_v7 }
  0xab   : > { %v854_v9 = vpop.xlane.xlu0 %853 }
  0xac   : > { %v862_v10 = vmul.f32 %v861_v8, %v854_v9 }
  0xae   : > { %v863_v11 = vsub.f32 %v848_v0, %v862_v10 }
  0xb0   : > { %v864_v12 = vmul.f32 %v863_v11, %v863_v11 }
  0xb2   : > { %v865_v13 = vsel %vm851_vm0, %v864_v12, 0.0 }
  0xb3   : > { %866 = vadd.xlane.f32.xlu0 %v865_v13 }
 0x126   : > { %v867_v14 = vpop.xlane.xlu0 %866 }
 0x127   : > { %v868_v15 = vmul.f32 %v867_v14, %v861_v8 }
 0x129   : > { %v869_v16 = vadd.f32 1e-12, %v868_v15 }
 0x12b   : > { %1557 = vrsqrt.f32 %v869_v16  ;;  %vm876_vm3 = vweird.f32 %v869_v16 }
 0x131   : > { %v1558_v17 = vpop.eup %1557 }
 0x132   : > { %v871_v18 = vmul.f32 %v1558_v17, %v869_v16  ;;  %vm877_vm2 = vweird.f32 %v1558_v17 }
 0x133   : > { %vm878_vm4 = vmor %vm876_vm3, %vm877_vm2 }
 0x134   : > { %v872_v19 = vmul.f32 %v1558_v17, %v871_v18 }
 0x136   : > { %v873_v20 = vmul.f32 0.5, %v872_v19 }
 0x138   : > { %v874_v21 = vsub.f32 1.5, %v873_v20 }
 0x13a   : > { %v875_v22 = vmul.f32 %v1558_v17, %v874_v21 }
 0x13c   : > { %v879_v24 = vsel %vm878_vm4, %v1558_v17, %v875_v22 }
 0x13d   : > { %v880_v26 = vmul.f32 %v879_v24, %v863_v11 }
 0x13f   : > { %v884_v27 = vmul.f32 %v1553_v23, %v880_v26 }
 0x141   : > { %v888_v28 = vadd.f32 %v1554_v25, %v884_v27 }
 0x143   : > { %889 = vst.msk [vmem:[#allocation2] sm:$0xff] %vm851_vm0, %v888_v28 }
 0x144 PF: > { %v894_v29 = vld [vmem:[%s1789_s17 + $0x10] sm:$0xff]  ;;  %v895_v30 = vld [vmem:[%s1789_s17 + $0x18] sm:$0xff]  ;;  %v892_v31 = vld [vmem:[%s1789_s17] sm:$0xff]  ;;  %vm926_vm5 = vcmask 261120   ;;  %s2058_s23 = scalar_lea.vmem %s2003_s5, %s1775_s26  ;;  %s1628_s19 = smov 96   ;;  %vm947_vm6 = vcmask 130048  }
 0x145   : > { %v922_v32 = vpack.c.bf16 %v895_v30, %v894_v29  ;;  %v893_v33 = vld [vmem:[%s1789_s17 + $0x8] sm:$0xff]  ;;  %v1559_v37 = vld [vmem:[%s2058_s23] ss:$0 sm:$0xff]  ;;  %s1627_s17 = smov 112   ;;  %s1629_s24 = smov 80   ;;  %vm990_vm7 = vcmask 1043456  }
 0x146   : > { %v921_v35 = vpack.c.bf16 %v893_v33, %v892_v31  ;;  %s1630_s16 = smov 64   ;;  %s1631_s15 = smov 48   ;;  %vm972_vm8 = vcmask 64512   ;;  %v899_v16 = vld [vmem:[%s1798_s28 + $0x10] sm:$0xff]  ;;  %v900_v17 = vld [vmem:[%s1798_s28 + $0x18] sm:$0xff]  ;;  %v897_v18 = vld [vmem:[%s1798_s28] sm:$0xff] }
 0x147   : > { %936 = vmatpush.bf16.msra.mxu0 %v922_v32  ;;  %s2059_s20 = sld [smem:[#allocation9_spill]]  ;;  %v1072_v19 = vpack.c.bf16 %v900_v17, %v899_v16  ;;  %v898_v20 = vld [vmem:[%s1798_s28 + $0x8] sm:$0xff]  ;;  %s1632_s27 = smov 16   ;;  %vm1169_vm13 = vcmask 523264  }
 0x148   : > { %s2060_s1 = sld [smem:[#allocation11_spill]]  ;;  %v1071_v21 = vpack.c.bf16 %v898_v20, %v897_v18  ;;  %s2062_s3 = scalar_lea.vmem %s2005_s7, %s1775_s26 }
 0x149   : > { %v1561_v29 = vld [vmem:[%s2062_s3] ss:$0 sm:$0xff]  ;;  %s2063_s21 = scalar_lea.vmem %s2006_s8, %s1775_s26  ;;  %s2068_s2 = sld [smem:[#allocation3_spill]] }
 0x14a   : > { %v1858_v34 = vld [vmem:[#allocation2] sm:$0xff] }
 0x14b   : > { %v920_v36 = vpack.c.bf16 %v1858_v34, %v1858_v34  ;;  %937 = vmatpush.bf16.msra.mxu0 %v921_v35 }
 0x14e   : > { %1488 = vmatmul.msk.bf16.vlgmr.msra.gmra.mxu0 %vm926_vm5, %v920_v36  ;;  %s2061_s25 = scalar_lea.vmem %s2060_s1, %s2059_s20  ;;  %v1633_v36 = vmov 32.0  }
 0x14f   : > { %v1560_v51 = vld [vmem:[%s2061_s25] ss:$0 sm:$0xff]  ;;  %1085 = vmatpush.bf16.msrb.mxu0 %v1072_v19  ;;  %p1496_p8 = scmp.ne.s32.totalorder %s2068_s2, 1 }
 0x150   : > { %s2069_s28 = sld [smem:[#allocation19_spill]] (!%p1496_p8) }
 0x151   : > { %s2073_s3 = sld [smem:[#allocation22_spill]] (!%p1496_p8) }
 0x153   : > { %1086 = vmatpush.bf16.msrb.mxu0 %v1071_v21 }
 0x1cb   : > { %v939_v38 = vpop.f32.mrf.mxu0 }
 0x1cc   : > { %v940_v39 = vadd.f32 %v1559_v37, %v939_v38 }
 0x1ce   : > { %v943_v40 = vpack.c.bf16 %v940_v39, %v940_v39 }
 0x1d0   : > { %1007 = vrot.lane.b32.xlu1 %v943_v40, %s1627_s17  ;;  %945 = vrot.lane.b32.xlu0 %v943_v40, %s1628_s19  ;;  %s2064_s19 = scalar_lea.vmem %s2007_s9, %s1775_s26 }
 0x1d3   : > { %v941_v41 = vpop.f32.mrf.mxu0 }
 0x1d8   : > { %1009 = vrot.lane.b32.xlu0 %v943_v40, %s1629_s24  ;;  %s2070_s24 = sld [smem:[#allocation21_spill]] (!%p1496_p8) }
 0x1e0   : > { %985 = vrot.lane.b32.xlu0 %v943_v40, %s1630_s16  ;;  %s2071_s16 = smov (!%p1496_p8), %s2070_s24 }
 0x1e8   : > { %1044 = vrot.lane.b32.xlu0 %v943_v40, %s1631_s15  ;;  %s2065_s15 = sld [smem:[#allocation17_spill]] }
 0x1ee   : > { %s2066_s20 = scalar_lea.vmem %s2065_s15, %s1775_s26 }
 0x1ef   : > { %v1564_v17 = vld [vmem:[%s2066_s20] ss:$0 sm:$0xff] }
 0x242   : > { %v946_v42 = vpop.permute.xlu0 %945  ;;  %v1008_v46 = vpop.permute.xlu1 %1007 }
 0x243   : > { %v952_v43 = vsel %vm947_vm6, %v946_v42, 0 }
 0x244   : > { %961 = vmatpush.bf16.xpose.msra.mxu1 %v952_v43 }
 0x24a   : > { %v1010_v44 = vpop.permute.xlu0 %1009 }
 0x24b   : > { %1489 = vmatmul.msk.bf16.vlgmr.msra.gmra.mxu1 %vm947_vm6, %v943_v40  ;;  %v1015_v45 = vsel %vm947_vm6, %v1010_v44, 0 }
 0x24c   : > { %1024 = vmatpush.bf16.xpose.msra.mxu3 %v1015_v45 }
 0x252   : > { %v986_v47 = vpop.permute.xlu0 %985 }
 0x253   : > { %1491 = vmatmul.msk.bf16.vlgmr.msra.gmra.mxu3 %vm947_vm6, %v1008_v46  ;;  %v992_v48 = vsel %vm990_vm7, %v986_v47, 0  ;;  %v906_v47 = vld [vmem:[%s1815_s18 + $0x10] sm:$0xff] }
 0x254   : > { %1001 = vmatpush.bf16.msra.mxu2 %v992_v48  ;;  %v907_v48 = vld [vmem:[%s1815_s18 + $0x18] sm:$0xff] }
 0x25a   : > { %v1045_v49 = vpop.permute.xlu0 %1044 }
 0x25b   : > { %v1050_v50 = vsel %vm990_vm7, %v1045_v49, 0  ;;  %v1132_v49 = vpack.c.bf16 %v907_v48, %v906_v47 }
 0x25c   : > { %1059 = vmatpush.bf16.msrb.mxu2 %v1050_v50  ;;  %v904_v50 = vld [vmem:[%s1815_s18] sm:$0xff] }
 0x25d   : > { %1145 = vmatpush.bf16.msrb.mxu1 %v1132_v49 }
 0x2c8   : > { %v963_v52 = vpop.f32.mrf.mxu1 }
 0x2c9   : > { %v967_v53 = vmul.f32 0.25, %v963_v52 }
 0x2cb   : > { %v971_v54 = vadd.f32 %v1560_v51, %v967_v53 }
 0x2cd   : > { %v973_v55 = vsel %vm972_vm8, %v971_v54, -inf }
 0x2ce   : > { %974 = vmax.xlane.f32.xlu1 %v973_v55 }
 0x2d0   : > { %v965_v56 = vpop.f32.mrf.mxu1 }
 0x2d6   : > { %v1026_v57 = vpop.f32.mrf.mxu3 }
 0x2d7   : > { %v1030_v58 = vmul.f32 0.25, %v1026_v57 }
 0x2d9   : > { %v1031_v59 = vadd.f32 %v1560_v51, %v1030_v58  ;;  %v905_v51 = vld [vmem:[%s1815_s18 + $0x8] sm:$0xff] }
 0x2da   : > { %v1131_v52 = vpack.c.bf16 %v905_v51, %v904_v50 }
 0x2db   : > { %v1032_v60 = vsel %vm972_vm8, %v1031_v59, -inf }
 0x2dc   : > { %1033 = vmax.xlane.f32.xlu2 %v1032_v60  ;;  %1146 = vmatpush.bf16.msrb.mxu1 %v1131_v52  ;;  %v1566_v52 = vld [vmem:[%s835_s22] ss:$0 sm:$0xff] }
 0x2de   : > { %v1028_v61 = vpop.f32.mrf.mxu3 }
 0x341   : > { %v975_v62 = vpop.xlane.xlu1 %974 }
 0x342   : > { %v976_v63 = vsub.f32 %v971_v54, %v975_v62  ;;  %v1562_v62 = vld [vmem:[%s2063_s21] ss:$0 sm:$0xff] }
 0x344   : > { %v977_v0 = vmul.f32 1.442695, %v976_v63 }
 0x346   : > { %1568 = vpow2.f32 %v977_v0 }
 0x34c   : > { %v1569_v1 = vpop.eup %1568 }
 0x34d   : > { %v979_v2 = vsel %vm972_vm8, %v1569_v1, 0.0 }
 0x34e   : > { %980 = vadd.xlane.f32.xlu2 %v979_v2 }
 0x34f   : > { %v1034_v3 = vpop.xlane.xlu2 %1033 }
 0x350   : > { %v1035_v4 = vsub.f32 %v1031_v59, %v1034_v3 }
 0x352   : > { %v1036_v5 = vmul.f32 1.442695, %v1035_v4 }
 0x354   : > { %1570 = vpow2.f32 %v1036_v5  ;;  %v915_v5 = vld [vmem:[%s1829_s30 + $0x30] sm:$0xff] }
 0x35a   : > { %v1571_v6 = vpop.eup %1570 }
 0x35b   : > { %v1038_v7 = vsel %vm972_vm8, %v1571_v6, 0.0 }
 0x35c   : > { %1039 = vadd.xlane.f32.xlu2 %v1038_v7 }
 0x3c1   : > { %v981_v8 = vpop.xlane.xlu2 %980 }
 0x3c2   : > { %1572 = vrcp.f32 %v981_v8  ;;  %v913_v8 = vld [vmem:[%s1829_s30 + $0x20] sm:$0xff] }
 0x3c8   : > { %v1573_v9 = vpop.eup %1572 }
 0x3c9   : > { %v983_v10 = vmul.f32 %v1573_v9, %v1569_v1  ;;  %v1563_v1 = vld [vmem:[%s2064_s19] ss:$0 sm:$0xff]  ;;  %v914_v9 = vld [vmem:[%s1829_s30 + $0x28] sm:$0xff] }
 0x3cb   : > { %v984_v11 = vpack.c.bf16 %v983_v10, %v983_v10  ;;  %v1164_v10 = vpack.c.bf16 %v914_v9, %v913_v8 }
 0x3cd   : > { %1490 = vmatmul.msk.bf16.vlgmr.msra.gmra.mxu2 %vm972_vm8, %v984_v11  ;;  %v911_v11 = vld [vmem:[%s1829_s30 + $0x10] sm:$0xff] }
 0x3cf   : > { %v1040_v12 = vpop.xlane.xlu2 %1039 }
 0x3d0   : > { %1574 = vrcp.f32 %v1040_v12  ;;  %v912_v12 = vld [vmem:[%s1829_s30 + $0x18] sm:$0xff] }
 0x3d1   : > { %1576 = vrcp.f32 %v1633_v36 }
 0x3d6   : > { %v1575_v13 = vpop.eup %1574 }
 0x3d7   : > { %v1042_v14 = vmul.f32 %v1575_v13, %v1571_v6  ;;  %v1577_v37 = vpop.eup %1576  ;;  %v916_v6 = vld [vmem:[%s1829_s30 + $0x38] sm:$0xff]  ;;  %v1163_v13 = vpack.c.bf16 %v912_v12, %v911_v11 }
 0x3d8   : > { %v1097_v38 = vmul.f32 32.0, %v1577_v37  ;;  %vm1101_vm9 = vweird.f32 %v1577_v37  ;;  %v1165_v7 = vpack.c.bf16 %v916_v6, %v915_v5 }
 0x3d9   : > { %v1043_v15 = vpack.c.bf16 %v1042_v14, %v1042_v14  ;;  %v909_v14 = vld [vmem:[%s1829_s30] sm:$0xff] }
 0x3da   : > { %v1098_v39 = vsub.f32 1.0, %v1097_v38  ;;  %1177 = vmatpush.bf16.msrb.mxu3 %v1165_v7 }
 0x3dc   : > { %v1099_v40 = vmul.f32 %v1577_v37, %v1098_v39 }
 0x3dd   : > { %1492 = vmatmul.msk.bf16.vlgmr.msrb.gmra.mxu2 %vm972_vm8, %v1043_v15  ;;  %v910_v15 = vld [vmem:[%s1829_s30 + $0x8] sm:$0xff] }
 0x3de   : > { %v1100_v41 = vadd.f32 %v1577_v37, %v1099_v40  ;;  %1178 = vmatpush.bf16.msrb.mxu3 %v1164_v10  ;;  %v1162_v16 = vpack.c.bf16 %v910_v15, %v909_v14 }
 0x3e0   : > { %v1896_v42 = vsel %vm1101_vm9, %v1577_v37, %v1100_v41 }
 0x3e2   : > { %1179 = vmatpush.bf16.msrb.mxu3 %v1163_v13 }
 0x3e6   : > { %1180 = vmatpush.bf16.msrb.mxu3 %v1162_v16 }
 0x450   : > { %v1003_v22 = vpop.f32.mrf.mxu2 }
 0x458   : > { %v1005_v23 = vpop.f32.mrf.mxu2 }
 0x460   : > { %v1061_v24 = vpop.f32.mrf.mxu2 }
 0x461   : > { %1066 = vrot.lane.b32.xlu2 %v1061_v24, %s1632_s27  ;;  %s2072_s27 = sld [smem:[#allocation20_spill]] (!%p1496_p8) }
 0x468   : > { %v1063_v25 = vpop.f32.mrf.mxu2 }
 0x4bb   : > { %v1067_v26 = vpop.permute.xlu2 %1066 }
 0x4bc   : > { %v1069_v27 = vsel %vm947_vm6, %v1003_v22, %v1067_v26 }
 0x4bd   : > { %v1070_v28 = vpack.c.bf16 %v1069_v27, %v1069_v27 }
 0x4bf   : > { %1493 = vmatmul.msk.bf16.vlgmr.msrb.gmra.mxu0 %vm926_vm5, %v1070_v28 }
 0x53c   : > { %v1088_v30 = vpop.f32.mrf.mxu0 }
 0x53d   : > { %v1089_v31 = vadd.f32 %v1561_v29, %v1088_v30 }
 0x53f   : > { %v1092_v32 = vadd.f32 %v1089_v31, %v1858_v34  ;;  %v1565_v31 = vld [vmem:[%s832_s0] ss:$0 sm:$0xff] }
 0x541   : > { %v1093_v33 = vsel %vm926_vm5, %v1092_v32, 0.0 }
 0x542   : > { %1094 = vadd.xlane.f32.xlu0 %v1093_v33 }
 0x544   : > { %v1090_v35 = vpop.f32.mrf.mxu0 }
 0x5b5   : > { %v1095_v43 = vpop.xlane.xlu0 %1094 }
 0x5b6   : > { %v1103_v34 = vmul.f32 %v1896_v42, %v1095_v43 }
 0x5b8   : > { %v1104_v44 = vsub.f32 %v1092_v32, %v1103_v34 }
 0x5ba   : > { %v1105_v45 = vmul.f32 %v1104_v44, %v1104_v44 }
 0x5bc   : > { %v1106_v46 = vsel %vm926_vm5, %v1105_v45, 0.0 }
 0x5bd   : > { %1107 = vadd.xlane.f32.xlu2 %v1106_v46 }
 0x630   : > { %v1108_v53 = vpop.xlane.xlu2 %1107 }
 0x631   : > { %v1109_v54 = vmul.f32 %v1108_v53, %v1896_v42 }
 0x633   : > { %v1110_v55 = vadd.f32 1e-12, %v1109_v54 }
 0x635   : > { %1578 = vrsqrt.f32 %v1110_v55  ;;  %vm1117_vm11 = vweird.f32 %v1110_v55 }
 0x63b   : > { %v1579_v56 = vpop.eup %1578 }
 0x63c   : > { %v1112_v57 = vmul.f32 %v1579_v56, %v1110_v55  ;;  %vm1118_vm10 = vweird.f32 %v1579_v56 }
 0x63d   : > { %vm1119_vm12 = vmor %vm1117_vm11, %vm1118_vm10 }
 0x63e   : > { %v1113_v58 = vmul.f32 %v1579_v56, %v1112_v57 }
 0x640   : > { %v1114_v59 = vmul.f32 0.5, %v1113_v58 }
 0x642   : > { %v1115_v60 = vsub.f32 1.5, %v1114_v59 }
 0x644   : > { %v1116_v61 = vmul.f32 %v1579_v56, %v1115_v60 }
 0x646   : > { %v1120_v63 = vsel %vm1119_vm12, %v1579_v56, %v1116_v61 }
 0x647   : > { %v1121_v0 = vmul.f32 %v1120_v63, %v1104_v44 }
 0x649   : > { %v1125_v2 = vmul.f32 %v1562_v62, %v1121_v0 }
 0x64b   : > { %v1129_v3 = vadd.f32 %v1563_v1, %v1125_v2 }
 0x64d   : > { %v1130_v4 = vpack.c.bf16 %v1129_v3, %v1129_v3 }
 0x64f   : > { %1494 = vmatmul.msk.bf16.vlgmr.msrb.gmra.mxu1 %vm926_vm5, %v1130_v4 }
 0x6cc   : > { %v1148_v18 = vpop.f32.mrf.mxu1 }
 0x6cd   : > { %v1149_v19 = vadd.f32 %v1564_v17, %v1148_v18 }
 0x6cf   : > { %v1152_v20 = vmul.f32 %v1149_v19, %v1149_v19 }
 0x6d1   : > { %v1153_v21 = vmul.f32 %v1152_v20, %v1149_v19 }
 0x6d3   : > { %v1154_v22 = vmul.f32 0.044715, %v1153_v21 }
 0x6d4   : > { %v1150_v23 = vpop.f32.mrf.mxu1 }
 0x6d5   : > { %v1155_v24 = vadd.f32 %v1154_v22, %v1149_v19 }
 0x6d7   : > { %v1156_v25 = vmul.f32 0.7978846, %v1155_v24 }
 0x6d9   : > { %1580 = vtanh.f32 %v1156_v25 }
 0x6df   : > { %v1581_v26 = vpop.eup %1580 }
 0x6e0   : > { %v1158_v27 = vadd.f32 1.0, %v1581_v26 }
 0x6e2   : > { %v1159_v28 = vmul.f32 0.5, %v1158_v27 }
 0x6e4   : > { %v1160_v29 = vmul.f32 %v1159_v28, %v1149_v19 }
 0x6e6   : > { %v1161_v30 = vpack.c.bf16 %v1160_v29, %v1160_v29 }
 0x6e8   : > { %1495 = vmatmul.msk.bf16.vlgmr.msrb.gmra.mxu3 %vm1169_vm13, %v1161_v30 }
 0x76b   : > { %v1182_v32 = vpop.f32.mrf.mxu3 }
 0x76c   : > { %v1183_v33 = vadd.f32 %v1565_v31, %v1182_v32 }
 0x76e   : > { %v1186_v35 = vadd.f32 %v1183_v33, %v1129_v3 }
 0x770   : > { %v1187_v36 = vsel %vm926_vm5, %v1186_v35, 0.0 }
 0x771   : > { %1188 = vadd.xlane.f32.xlu1 %v1187_v36 }
 0x773   : > { %v1184_v37 = vpop.f32.mrf.mxu3 }
 0x7e4   : > { %v1189_v38 = vpop.xlane.xlu1 %1188 }
 0x7e5   : > { %v1190_v39 = vmul.f32 %v1189_v38, %v1896_v42 }
 0x7e7   : > { %v1191_v40 = vsub.f32 %v1186_v35, %v1190_v39 }
 0x7e9   : > { %v1192_v41 = vmul.f32 %v1191_v40, %v1191_v40 }
 0x7eb   : > { %v1193_v43 = vsel %vm926_vm5, %v1192_v41, 0.0 }
 0x7ec   : > { %1194 = vadd.xlane.f32.xlu1 %v1193_v43 }
 0x85f   : > { %v1195_v34 = vpop.xlane.xlu1 %1194 }
 0x860   : > { %v1196_v44 = vmul.f32 %v1195_v34, %v1896_v42  ;;  %v1567_v42 = vld [vmem:[%s838_s10] ss:$0 sm:$0xff] }
 0x862   : > { %v1197_v45 = vadd.f32 1e-12, %v1196_v44 }
 0x864   : > { %1582 = vrsqrt.f32 %v1197_v45  ;;  %vm1204_vm15 = vweird.f32 %v1197_v45 }
 0x86a   : > { %v1583_v46 = vpop.eup %1582 }
 0x86b   : > { %v1199_v47 = vmul.f32 %v1583_v46, %v1197_v45  ;;  %vm1205_vm14 = vweird.f32 %v1583_v46 }
 0x86c   : > { %vm1206_vm0 = vmor %vm1204_vm15, %vm1205_vm14 }
 0x86d   : > { %v1200_v48 = vmul.f32 %v1583_v46, %v1199_v47 }
 0x86f   : > { %v1201_v49 = vmul.f32 0.5, %v1200_v48 }
 0x871   : > { %v1202_v50 = vsub.f32 1.5, %v1201_v49 }
 0x873   : > { %v1203_v51 = vmul.f32 %v1583_v46, %v1202_v50 }
 0x875   : > { %v1207_v53 = vsel %vm1206_vm0, %v1583_v46, %v1203_v51 }
 0x876   : > { %v1208_v54 = vmul.f32 %v1207_v53, %v1191_v40 }
 0x878   : > { %v1212_v55 = vmul.f32 %v1566_v52, %v1208_v54  ;;  %1221 = sbr.rel (%p1496_p8) target bundleno = 2449 (0x991), region = 108 }
 0x87a   : > { %v1216_v56 = vadd.f32 %v1567_v42, %v1212_v55 }
 0x87c   : > { %1217 = vst.msk [vmem:[#allocation2] sm:$0xff] %vm926_vm5, %v1216_v56 }
 0x87d   : > { %v1225_v57 = vld [vmem:[%s2069_s28 + $0x10] sm:$0xff]  ;;  %v1226_v58 = vld [vmem:[%s2069_s28 + $0x18] sm:$0xff]  ;;  %v1223_v59 = vld [vmem:[%s2069_s28] sm:$0xff] }
 0x87e   : > { %v1229_v60 = vpack.c.bf16 %v1226_v58, %v1225_v57  ;;  %v1224_v61 = vld [vmem:[%s2069_s28 + $0x8] sm:$0xff]  ;;  %v1253_v1 = vld [vmem:[%s2070_s24 + $0x10] sm:$0xff]  ;;  %v1254_v2 = vld [vmem:[%s2071_s16 + $0x18] sm:$0xff] }
 0x87f   : > { %v1228_v62 = vpack.c.bf16 %v1224_v61, %v1223_v59  ;;  %v1257_v3 = vpack.c.bf16 %v1254_v2, %v1253_v1  ;;  %v1251_v4 = vld [vmem:[%s2071_s16] sm:$0xff]  ;;  %v1252_v5 = vld [vmem:[%s2071_s16 + $0x8] sm:$0xff] }
 0x880   : > { %1243 = vmatpush.bf16.msra.mxu0 %v1229_v60  ;;  %v1256_v6 = vpack.c.bf16 %v1252_v5, %v1251_v4  ;;  %v1584_v7 = vld [vmem:[%s2072_s27] ss:$0 sm:$0xff] }
 0x881   : > { %1271 = vmatpush.bf16.msra.mxu1 %v1257_v3  ;;  %v1585_v13 = vld [vmem:[%s2073_s3] ss:$0 sm:$0xff] }
 0x883   : > { %v1222_v63 = vld [vmem:[#allocation2] sm:$0xff] }
 0x884   : > { %v1227_v0 = vpack.c.bf16 %v1222_v63, %v1222_v63  ;;  %1244 = vmatpush.bf16.msra.mxu0 %v1228_v62 }
 0x885   : > { %1272 = vmatpush.bf16.msra.mxu1 %v1256_v6 }
 0x887   : > { %1497 = vmatmul.msk.bf16.vlgmr.msra.gmra.mxu0 %vm926_vm5, %v1227_v0 }
 0x904   : > { %v1246_v8 = vpop.f32.mrf.mxu0 }
 0x905   : > { %v1247_v9 = vadd.f32 %v1584_v7, %v1246_v8 }
 0x907   : > { %v1250_v10 = vadd.f32 %v1247_v9, %v1222_v63 }
 0x909   : > { %v1255_v11 = vpack.c.bf16 %v1250_v10, %v1250_v10 }
 0x90b   : > { %1498 = vmatmul.msk.bf16.vlgmr.msra.gmra.mxu1 %vm926_vm5, %v1255_v11 }
 0x90c   : > { %v1248_v12 = vpop.f32.mrf.mxu0 }
 0x988   : > { %v1274_v14 = vpop.f32.mrf.mxu1 }
 0x989   : > { %v1275_v15 = vadd.f32 %v1585_v13, %v1274_v14 }
 0x98b   : > { %1278 = vst [vmem:[%s1842_s11] sm:$0xff] %v1275_v15 }
 0x990   : > { %v1276_v16 = vpop.f32.mrf.mxu1 }
 0x991 PF: > { %s2074_s22 = sld [smem:[#allocation6_spill]] }
 0x992   : > { %s2075_s1 = sld [smem:[#allocation4_spill]] }
 0x993   : > { %s2077_s23 = sld [smem:[#allocation7_spill]] }
 0x994   : > { %s2078_s24 = sld [smem:[#allocation8_spill]] }
 0x997   : > { %s30_s2 = sadd.s32 1, %s2074_s22   ;;  %s2076_s22 = sld [smem:[#allocation5_spill]] }
 0x998   : > { %p27_p9 = scmp.ge.s32.totalorder %s30_s2, 6  }
 0x99a   :  { %29 = sbr.rel (!%p27_p9) target bundleno = 15 (0xf), region = 177 }

</bundles_post_ra>
